<compile_context>
chip_gen: v7x
topology: tpu7x:2x2x1
jax: 0.10.0
libtpu: 0.0.40
codegen_flags: <defaults>
</compile_context>

<pallas_src>
import functools

import jax
import jax.numpy as jnp
from jax.experimental import pallas as pl
from jax.experimental.pallas import tpu as pltpu


# ---------------------------------------------------------------------------
# Kernels
# ---------------------------------------------------------------------------
def _radix_softmax_kernel(x_ref, o_ref, *, radix, r):
    """Radix softmax with the (card, radix) -> (radix, card) permute folded in.

    x_ref: (tb, card, radix * r)  -- input dtype, natural channel order
    o_ref: (tb, radix, card, r)   -- input dtype, already-permuted layout
    The radix reduction is unrolled into elementwise VPU ops over the
    per-radix lane slices (no XLU sublane reduce, no padded radix tiles).
    """
    xs = [x_ref[:, :, i * r:(i + 1) * r].astype(jnp.float32)
          for i in range(radix)]                       # each (tb, card, r)
    m = xs[0]
    for t in xs[1:]:
        m = jnp.maximum(m, t)
    es = [jnp.exp(t - m) for t in xs]                  # EUP
    s = es[0]
    for t in es[1:]:
        s = s + t
    inv = 1.0 / s                                      # exact divide (free, HBM-bound)
    for i in range(radix):
        o_ref[:, i, :, :] = (es[i] * inv).astype(o_ref.dtype)


def _sigmoid_kernel(x_ref, o_ref):
    """Elementwise sigmoid; math in f32, result written in the input dtype."""
    x = x_ref[...].astype(jnp.float32)
    o_ref[...] = (1.0 / (1.0 + jnp.exp(-x))).astype(o_ref.dtype)


# ---------------------------------------------------------------------------
# Tiling helpers
# ---------------------------------------------------------------------------
def _tile(dim, unit, cap):
    """Largest block <= cap that is the full dim or a multiple of `unit`."""
    if dim <= unit:
        return dim
    if dim <= cap and dim % unit == 0:
        return dim
    return min((dim // unit) * unit, cap)


def _batch_tile(batch, per_row_f32_bytes, budget=2 << 20):
    """Rows per block so the f32 working set stays ~2 MiB (safe on all gens)."""
    if batch * per_row_f32_bytes <= budget:
        return batch                      # single-block fast path
    return max(1, min(batch, budget // max(per_row_f32_bytes, 1)))


# ---------------------------------------------------------------------------
# pallas_call wrappers
# ---------------------------------------------------------------------------
def _pallas_radix_softmax(x3d, radix):
    """x3d: (B, card, radix*r) -> (B, radix, card, r), softmax over radix."""
    B, card, rr = x3d.shape
    r = rr // radix
    # ~4 live f32 slabs of (card, rr) per row (input + exp slices + denom).
    tb = _batch_tile(B, card * rr * 4 * 4)
    grid = (pl.cdiv(B, tb),)
    kernel = functools.partial(_radix_softmax_kernel, radix=radix, r=r)
    return pl.pallas_call(
        kernel,
        out_shape=jax.ShapeDtypeStruct((B, radix, card, r), x3d.dtype),
        grid_spec=pltpu.PrefetchScalarGridSpec(
            num_scalar_prefetch=0,
            grid=grid,
            in_specs=[pl.BlockSpec((tb, card, rr), lambda i: (i, 0, 0))],
            out_specs=pl.BlockSpec((tb, radix, card, r),
                                   lambda i: (i, 0, 0, 0))),
        compiler_params=pltpu.CompilerParams(
            dimension_semantics=("parallel",)),
    )(x3d)


def _pallas_sigmoid(x2d):
    """x2d: (B, N) -> sigmoid(x2d), dtype preserved."""
    B, N = x2d.shape
    tb = _tile(B, 8, 256)
    tn = _tile(N, 128, 1024)
    grid = (pl.cdiv(B, tb), pl.cdiv(N, tn))
    return pl.pallas_call(
        _sigmoid_kernel,
        out_shape=jax.ShapeDtypeStruct((B, N), x2d.dtype),
        grid_spec=pltpu.PrefetchScalarGridSpec(
            num_scalar_prefetch=0,
            grid=grid,
            in_specs=[pl.BlockSpec((tb, tn), lambda i, j: (i, j))],
            out_specs=pl.BlockSpec((tb, tn), lambda i, j: (i, j))),
        compiler_params=pltpu.CompilerParams(
            dimension_semantics=("parallel", "parallel")),
    )(x2d)


# ---------------------------------------------------------------------------
# Module forward
# ---------------------------------------------------------------------------
def rsoftmax_forward(x, radix, cardinality):
    """rSoftMax forward. x: (B, C, H, W) (or any (B, ...)); dtype preserved."""
    batch = x.shape[0]
    if radix > 1:
        n = 1
        for d in x.shape[1:]:
            n *= d
        assert n % (cardinality * radix) == 0, "channels not divisible by card*radix"
        r = n // (cardinality * radix)
        # Free reshapes only; the transpose lives in the kernel's output indexing.
        x3 = x.reshape(batch, cardinality, radix * r)
        y = _pallas_radix_softmax(x3, radix)          # (B, radix, card, r)
        return y.reshape(batch, radix * cardinality * r)   # row-major flatten: free
    else:
        y = _pallas_sigmoid(x.reshape(batch, -1))
        return y.reshape(x.shape)


class RSoftMax:
    """Mirror of the PyTorch rSoftMax module (eval semantics identical)."""

    def __init__(self, radix, cardinality):
        self.radix = radix
        self.cardinality = cardinality

    def __call__(self, x):
        return rsoftmax_forward(x, self.radix, self.cardinality)


# ---------------------------------------------------------------------------
# Pure-JAX reference (correctness check)
# ---------------------------------------------------------------------------
def _rsoftmax_ref(x, radix, cardinality):
    xf = x.astype(jnp.float32)
    batch = x.shape[0]
    if radix > 1:
        xr = xf.reshape(batch, cardinality, radix, -1)
        xr = jnp.swapaxes(xr, 1, 2)
        xr = jax.nn.softmax(xr, axis=1)
        return xr.reshape(batch, -1).astype(x.dtype)
    return jax.nn.sigmoid(xf).astype(x.dtype)


if __name__ == "__main__":
    key = jax.random.PRNGKey(0)
    k1, k2, k3 = jax.random.split(key, 3)

    # 1) Typical SplAtConv2d attention logits: (B, channels*radix, 1, 1), f32.
    batch, cardinality, radix, channels = 2, 4, 2, 64
    x = jax.random.normal(k1, (batch, channels * radix, 1, 1), jnp.float32)
    mod = RSoftMax(radix=radix, cardinality=cardinality)
    y = jax.block_until_ready(mod(x))
    assert y.shape == (batch, channels * radix) and y.dtype == x.dtype
    y_ref = _rsoftmax_ref(x, radix, cardinality)
    assert jnp.allclose(y, y_ref, atol=1e-5, rtol=1e-5), float(
        jnp.max(jnp.abs(y - y_ref)))

    # 2) bf16 input: dtype preserved, f32 math only inside the kernel.
    xb = jax.random.normal(
        k2, (batch, channels * radix, 1, 1), jnp.float32).astype(jnp.bfloat16)
    yb = jax.block_until_ready(mod(xb))
    assert yb.shape == (batch, channels * radix) and yb.dtype == jnp.bfloat16
    yb_ref = _rsoftmax_ref(xb, radix, cardinality)
    assert jnp.allclose(yb.astype(jnp.float32), yb_ref.astype(jnp.float32),
                        atol=2e-2, rtol=2e-2)

    # 3) radix == 1 branch: sigmoid, shape & dtype preserved.
    x1 = jax.random.normal(k3, (batch, 32, 1, 1), jnp.float32)
    mod1 = RSoftMax(radix=1, cardinality=cardinality)
    y1 = jax.block_until_ready(mod1(x1))
    assert y1.shape == x1.shape and y1.dtype == x1.dtype
    y1_ref = _rsoftmax_ref(x1, 1, cardinality)
    assert jnp.allclose(y1, y1_ref, atol=1e-5, rtol=1e-5)

    print("KERNEL_OK")
</pallas_src>

<mosaic_0001>
module attributes {stable_mosaic.version = 11 : i64} {
  func.func @_radix_softmax_kernel(%arg0: i32, %arg1: memref<2x4x32xf32, #tpu.memory_space<vmem>>, %arg2: memref<2x2x4x16xf32, #tpu.memory_space<vmem>>) attributes {dimension_semantics = [#tpu.dimension_semantics<parallel>], iteration_bounds = array<i64: 1>, scalar_prefetch = 0 : i64, scratch_operands = 0 : i64, tpu.core_type = #tpu.core_type<tc>, window_params = [{transform_indices = @transform_0, window_bounds = array<i64: 2, 4, 32>}, {transform_indices = @transform_1, window_bounds = array<i64: 2, 2, 4, 16>}]} {
    %c0 = arith.constant 0 : index
    %c0_0 = arith.constant 0 : index
    %c0_1 = arith.constant 0 : index
    %0 = vector.load %arg1[%c0, %c0_0, %c0_1] : memref<2x4x32xf32, #tpu.memory_space<vmem>>, vector<2x4x16xf32>
    %c0_2 = arith.constant 0 : index
    %c0_3 = arith.constant 0 : index
    %c16 = arith.constant 16 : index
    %1 = vector.load %arg1[%c0_2, %c0_3, %c16] : memref<2x4x32xf32, #tpu.memory_space<vmem>>, vector<2x4x16xf32>
    %2 = arith.maximumf %0, %1 : vector<2x4x16xf32>
    %3 = arith.subf %0, %2 : vector<2x4x16xf32>
    %4 = math.exp %3 : vector<2x4x16xf32>
    %5 = arith.subf %1, %2 : vector<2x4x16xf32>
    %6 = math.exp %5 : vector<2x4x16xf32>
    %7 = arith.addf %4, %6 : vector<2x4x16xf32>
    %cst = arith.constant 1.000000e+00 : f32
    %8 = vector.broadcast %cst : f32 to vector<2x4x16xf32>
    %9 = arith.divf %8, %7 : vector<2x4x16xf32>
    %10 = arith.mulf %4, %9 : vector<2x4x16xf32>
    %c0_4 = arith.constant 0 : index
    %c0_5 = arith.constant 0 : index
    %c0_6 = arith.constant 0 : index
    %c0_7 = arith.constant 0 : index
    %11 = vector.load %arg2[%c0_4, %c0_5, %c0_6, %c0_7] : memref<2x2x4x16xf32, #tpu.memory_space<vmem>>, vector<2x1x4x16xf32>
    %12 = vector.shape_cast %11 : vector<2x1x4x16xf32> to vector<2x4x16xf32>
    %13 = vector.shape_cast %10 : vector<2x4x16xf32> to vector<2x1x4x16xf32>
    tpu.vector_store %arg2[%c0_4, %c0_5, %c0_6, %c0_7], %13 {strides = array<i32>} : memref<2x2x4x16xf32, #tpu.memory_space<vmem>>, vector<2x1x4x16xf32>,
    %14 = arith.mulf %6, %9 : vector<2x4x16xf32>
    %c0_8 = arith.constant 0 : index
    %c1 = arith.constant 1 : index
    %c0_9 = arith.constant 0 : index
    %c0_10 = arith.constant 0 : index
    %15 = vector.load %arg2[%c0_8, %c1, %c0_9, %c0_10] : memref<2x2x4x16xf32, #tpu.memory_space<vmem>>, vector<2x1x4x16xf32>
    %16 = vector.shape_cast %15 : vector<2x1x4x16xf32> to vector<2x4x16xf32>
    %17 = vector.shape_cast %14 : vector<2x4x16xf32> to vector<2x1x4x16xf32>
    tpu.vector_store %arg2[%c0_8, %c1, %c0_9, %c0_10], %17 {strides = array<i32>} : memref<2x2x4x16xf32, #tpu.memory_space<vmem>>, vector<2x1x4x16xf32>,
    return
  }
  func.func @transform_0(%arg0: i32) -> (i32, i32, i32) {
    %c0_i32 = arith.constant 0 : i32
    %c0_i32_0 = arith.constant 0 : i32
    %c0_i32_1 = arith.constant 0 : i32
    return %arg0, %c0_i32, %c0_i32_0 : i32, i32, i32
  }
  func.func @transform_1(%arg0: i32) -> (i32, i32, i32, i32) {
    %c0_i32 = arith.constant 0 : i32
    %c0_i32_0 = arith.constant 0 : i32
    %c0_i32_1 = arith.constant 0 : i32
    %c0_i32_2 = arith.constant 0 : i32
    return %arg0, %c0_i32, %c0_i32_0, %c0_i32_1 : i32, i32, i32, i32
  }
}

</mosaic_0001>

<bundles_post_ra>
// kernel: tpu_custom_call.1
= control target key start
LH: loop header
LB: loop body
LE: loop exit
PB: predicated region body
PF: predicated region fallthrough
CT: control target
= control target key end

     0   :  { %6 = vsyncpa [#allocation3], 0  ;;  %s238_s0 = inlined_call_operand.hbm [shape: f32[2,4,32], index: 0, kind: input, shape index: {}]   ;;  %s239_s1 = inlined_call_operand.hbm [shape: f32[2,2,4,16], index: 1, kind: output, shape index: {}]  }
   0x1   :  { %7 = vsyncpa [#allocation4], 0  ;;  %s178_s6 = smov [#allocation2]   ;;  %s130_s10 = scalar_lea.hbm %s238_s0, 128 }
   0x2   :  { %s13_s7 = sshll.u32 %s178_s6, 4  ;;  %p131_p0 = scmp.ne.s32.totalorder %s238_s0, %s130_s10  ;;  %s14_s7 = int_to_ptr.vmem [resolvable:$true] %s13_s7 }
   0x3   :  { %p134_p1 = scmp.lt.u32.totalorder %s130_s10, %s238_s0 }
   0x5   :  { %p136_p2 = pnand %p134_p1, %p131_p0 }
   0x7   :  { %139 = shalt.err (!%p136_p2)
}
   0x8   :  { %s140_s15 = scalar_lea.vmem %s14_s7, 128  ;;  %p145_p4 = scmp.lt.s32.totalorder %s14_s7, %s14_s7 }
   0x9   :  { %p141_p3 = scmp.ne.s32.totalorder %s14_s7, %s140_s15  ;;  %p146_p5 = scmp.lt.s32.totalorder %s140_s15, %s140_s15 }
   0xb   :  { %p147_p6 = por %p146_p5, %p145_p4 }
   0xd   :  { %p148_p7 = pnand %p147_p6, %p141_p3 }
   0xf   :  { %151 = shalt.err (!%p148_p7)
}
  0x10   :  { %s179_s16 = smov 64   ;;  %s180_s17 = smov 4  }
  0x11   :  { %19 = dma.hbm_to_vmem [thread:$0]  %s238_s0, 128, %s14_s7, [#allocation3], %s179_s16, %s179_s16, %s180_s17  }
  0x12   :  { %174 = dma.done.wait [#allocation3], 128  }
  0x13   :  { %175 = vsyncadd [#allocation3], 4294967168  ;;  %v23_v0 = vld [vmem:[#allocation2] sm:$0xf]  ;;  %s181_s20 = smov 112   ;;  %s182_s21 = smov 16  }
  0x14   :  { %27 = vrot.lane.b32.xlu0 %v23_v0, %s181_s20  ;;  %v24_v1 = vld [vmem:[#allocation2 + $0x4] sm:$0xf]  ;;  %vm71_vm0 = vcmask 125952   ;;  %s183_s0 = smov [#allocation5]  }
  0x15   :  { %s100_s22 = sshll.u32 %s183_s0, 4  ;;  %s101_s22 = int_to_ptr.vmem [resolvable:$true] %s100_s22 }
  0x16   :  { %s152_s23 = scalar_lea.vmem %s101_s22, 256  ;;  %p157_p9 = scmp.lt.s32.totalorder %s101_s22, %s101_s22 }
  0x17   :  { %p153_p8 = scmp.ne.s32.totalorder %s101_s22, %s152_s23  ;;  %p158_p10 = scmp.lt.s32.totalorder %s152_s23, %s152_s23 }
  0x18   :  { %29 = vrot.lane.b32.xlu0 %v24_v1, %s181_s20 }
  0x19   :  { %p159_p11 = por %p158_p10, %p157_p9 }
  0x1b   :  { %p160_p12 = pnand %p159_p11, %p153_p8 }
  0x86   :  { %v28_v2 = vpop.permute.xlu0 %27 }
  0x87   :  { %v33_v3 = vmax.f32 %v23_v0, %v28_v2 }
  0x89   :  { %43 = vrot.lane.b32.xlu1 %v33_v3, %s182_s21  ;;  %v35_v14 = vsub.f32 %v23_v0, %v33_v3 }
  0x8a   :  { %v30_v4 = vpop.permute.xlu0 %29 }
  0x8b   :  { %v34_v5 = vmax.f32 %v24_v1, %v30_v4  ;;  %v37_v15 = vmul.f32 1.442695, %v35_v14 }
  0x8d   :  { %45 = vrot.lane.b32.xlu1 %v34_v5, %s182_s21  ;;  %v36_v16 = vsub.f32 %v24_v1, %v34_v5 }
  0x8f   :  { %v39_v17 = vmul.f32 1.442695, %v36_v16 }
  0xfb   :  { %v44_v6 = vpop.permute.xlu1 %43 }
  0xfc   :  { %v49_v7 = vsub.f32 %v23_v0, %v44_v6 }
  0xfe   :  { %v51_v8 = vmul.f32 1.442695, %v49_v7 }
  0xff   :  { %v46_v9 = vpop.permute.xlu1 %45 }
 0x100   :  { %118 = vpow2.f32 %v51_v8  ;;  %v50_v10 = vsub.f32 %v24_v1, %v46_v9 }
 0x102   :  { %v53_v11 = vmul.f32 1.442695, %v50_v10 }
 0x104   :  { %120 = vpow2.f32 %v53_v11 }
 0x105   :  { %122 = vpow2.f32 %v37_v15 }
 0x106   :  { %124 = vpow2.f32 %v39_v17 }
 0x10a   :  { %v119_v12 = vpop.eup %118 }
 0x10b   :  { %57 = vrot.lane.b32.xlu0 %v119_v12, %s181_s20 }
 0x10e   :  { %v121_v13 = vpop.eup %120 }
 0x10f   :  { %59 = vrot.lane.b32.xlu1 %v121_v13, %s181_s20  ;;  %v123_v18 = vpop.eup %122 }
 0x110   :  { %v125_v21 = vpop.eup %124 }
 0x17d   :  { %v58_v19 = vpop.permute.xlu0 %57 }
 0x17e   :  { %v63_v20 = vadd.f32 %v123_v18, %v58_v19 }
 0x180   :  { %126 = vrcp.f32 %v63_v20 }
 0x181   :  { %v60_v22 = vpop.permute.xlu1 %59 }
 0x182   :  { %v64_v23 = vadd.f32 %v125_v21, %v60_v22 }
 0x184   :  { %128 = vrcp.f32 %v64_v23 }
 0x18a   :  { %v127_v24 = vpop.eup %126 }
 0x18b   :  { %v69_v25 = vmul.f32 %v127_v24, %v123_v18  ;;  %76 = vrot.lane.b32.xlu0 %v127_v24, %s182_s21 }
 0x18d   :  { %72 = vst.msk [vmem:[#allocation5] sm:$0xf] %vm71_vm0, %v69_v25 }
 0x18e   :  { %v129_v26 = vpop.eup %128 }
 0x18f   :  { %v70_v27 = vmul.f32 %v129_v26, %v125_v21  ;;  %78 = vrot.lane.b32.xlu1 %v129_v26, %s182_s21 }
 0x191   :  { %73 = vst.msk [vmem:[#allocation5 + $0x8] sm:$0xf] %vm71_vm0, %v70_v27 }
 0x1fd   :  { %v77_v28 = vpop.permute.xlu0 %76 }
 0x1fe   :  { %v82_v29 = vmul.f32 %v119_v12, %v77_v28 }
 0x200   :  { %86 = vrot.lane.b32.xlu0 %v82_v29, %s181_s20 }
 0x201   :  { %v79_v30 = vpop.permute.xlu1 %78 }
 0x202   :  { %v83_v31 = vmul.f32 %v121_v13, %v79_v30 }
 0x204   :  { %88 = vrot.lane.b32.xlu1 %v83_v31, %s181_s20 }
 0x272   :  { %v87_v32 = vpop.permute.xlu0 %86 }
 0x273   :  { %93 = vst.msk [vmem:[#allocation5 + $0x4] sm:$0xf] %vm71_vm0, %v87_v32 }
 0x276   :  { %v89_v33 = vpop.permute.xlu1 %88 }
 0x277   :  { %94 = vst.msk [vmem:[#allocation5 + $0xc] sm:$0xf] %vm71_vm0, %v89_v33 }
 0x278   :  { %163 = shalt.err (!%p160_p12)
}
 0x279   :  { %s164_s26 = scalar_lea.hbm %s239_s1, 256 }
 0x27a   :  { %p165_p13 = scmp.ne.s32.totalorder %s239_s1, %s164_s26  ;;  %p168_p0 = scmp.lt.u32.totalorder %s164_s26, %s239_s1 }
 0x27c   :  { %p170_p1 = pnand %p168_p0, %p165_p13 }
 0x27e   :  { %173 = shalt.err (!%p170_p1)
}
 0x27f   :  { %106 = dma.vmem_to_hbm [thread:$0]  %s101_s22, 256, %s239_s1, [#allocation4], %s179_s16, %s179_s16, %s180_s17  }
 0x280   :  { %176 = dma.done.wait [#allocation4], 256  }
 0x281   :  { %177 = vsyncadd [#allocation4], 4294967040 }
 0x282   :  { %110 = vsyncpa [#allocation3], 1 }
 0x283   :  { %111 = vsyncpa [#allocation4], 1 }

</bundles_post_ra>
